<compile_context>
chip_gen: v7x
topology: tpu7x:2x2x1
jax: 0.10.0
libtpu: 0.0.40
codegen_flags: <defaults>
</compile_context>

<pallas_src>
import functools
import math

import jax
import jax.numpy as jnp
from jax.experimental import pallas as pl
from jax.experimental.pallas import tpu as pltpu

TN = 128          # class (output) tile width: lane-dense, works on all MXU gens
LANE = 128        # feature-dim padding multiple


def _arc_margin_kernel(x_ref, w_ref, label_ref, o_ref, *,
                       cos_m, sin_m, th, mm, s, easy_margin, tn):
    j = pl.program_id(0)

    x = x_ref[...]                       # (B, Dp)  f32
    w = w_ref[...]                       # (TN, Dp) f32

    # F.normalize(p=2, dim=1, eps=1e-12):  v / max(||v||, eps)
    x_inv = jax.lax.rsqrt(jnp.maximum(jnp.sum(x * x, axis=-1, keepdims=True), 1e-24))
    w_inv = jax.lax.rsqrt(jnp.maximum(jnp.sum(w * w, axis=-1, keepdims=True), 1e-24))

    # bf16 operands for the MXU, f32 accumulation.  Contract on the last axis
    # of both operands (x_n @ w_n.T) so no transpose is ever materialized.
    xn = (x * x_inv).astype(jnp.bfloat16)
    wn = (w * w_inv).astype(jnp.bfloat16)
    cosine = jax.lax.dot_general(xn, wn, (((1,), (1,)), ((), ())),
                                 preferred_element_type=jnp.float32)   # (B, TN)

    sine = jnp.sqrt(jnp.clip(1.0 - cosine * cosine, 0.0, 1.0))
    phi = cosine * cos_m - sine * sin_m
    if easy_margin:
        phi = jnp.where(cosine > 0.0, phi, cosine)
    else:
        phi = jnp.where(cosine > th, phi, cosine - mm)

    # one_hot via global column index == label (replaces torch scatter_)
    cols = j * tn + jax.lax.broadcasted_iota(jnp.int32, cosine.shape, 1)
    one_hot = cols == label_ref[...]                                   # (B,1)->(B,TN)

    o_ref[...] = (jnp.where(one_hot, phi, cosine) * s).astype(o_ref.dtype)


def arc_margin_product(x, weight, label, *, s=30.0, m=0.5, easy_margin=False):
    """Forward of ArcMarginProduct.

    x:      (B, in_features)  float32
    weight: (out_features, in_features) float32
    label:  (B,) int
    returns (B, out_features) float32 logits (already scaled by s).
    """
    B, D = x.shape
    C, D2 = weight.shape
    assert D == D2, (D, D2)

    Dp = -(-D // LANE) * LANE
    Cp = -(-C // TN) * TN
    # Zero-pad only when needed (padded feature cols don't change norms/dots;
    # padded class rows are sliced off below and never match a label).
    if Dp != D:
        x = jnp.pad(x, ((0, 0), (0, Dp - D)))
        weight = jnp.pad(weight, ((0, 0), (0, Dp - D)))
    if Cp != C:
        weight = jnp.pad(weight, ((0, Cp - C), (0, 0)))
    label2d = label.astype(jnp.int32).reshape(B, 1)

    kernel = functools.partial(
        _arc_margin_kernel,
        cos_m=math.cos(m), sin_m=math.sin(m),
        th=math.cos(math.pi - m), mm=math.sin(math.pi - m) * m,
        s=s, easy_margin=easy_margin, tn=TN)

    out = pl.pallas_call(
        kernel,
        out_shape=jax.ShapeDtypeStruct((B, Cp), jnp.float32),
        grid=(Cp // TN,),
        in_specs=[
            pl.BlockSpec((B, Dp), lambda j: (0, 0)),    # x: resident across grid
            pl.BlockSpec((TN, Dp), lambda j: (j, 0)),   # weight: one class tile per step
            pl.BlockSpec((B, 1), lambda j: (0, 0)),     # labels
        ],
        out_specs=pl.BlockSpec((B, TN), lambda j: (0, j)),  # lane-dense logits tile
        compiler_params=pltpu.CompilerParams(
            dimension_semantics=("parallel",)),
    )(x, weight, label2d)

    if Cp != C:
        out = out[:, :C]
    return out


if __name__ == "__main__":
    key = jax.random.PRNGKey(0)
    kx, kw, kl = jax.random.split(key, 3)

    # small shapes consistent with the module: batch=8, in_features=128, classes=256
    B, D, C = 8, 128, 256
    x = jax.random.normal(kx, (B, D), jnp.float32)
    bound = math.sqrt(6.0 / (D + C))                       # xavier_uniform_
    weight = jax.random.uniform(kw, (C, D), jnp.float32, -bound, bound)
    label = jax.random.randint(kl, (B,), 0, C)

    fwd = jax.jit(functools.partial(arc_margin_product, s=30.0, m=0.5,
                                    easy_margin=False))
    out = jax.block_until_ready(fwd(x, weight, label))

    # pure-JAX reference (f32) for a tolerance check (kernel uses bf16 MXU operands)
    def reference(x, w, label, s=30.0, m=0.5):
        xn = x / jnp.maximum(jnp.linalg.norm(x, axis=1, keepdims=True), 1e-12)
        wn = w / jnp.maximum(jnp.linalg.norm(w, axis=1, keepdims=True), 1e-12)
        cosine = xn @ wn.T
        sine = jnp.sqrt(jnp.clip(1.0 - cosine ** 2, 0.0, 1.0))
        phi = cosine * math.cos(m) - sine * math.sin(m)
        phi = jnp.where(cosine > math.cos(math.pi - m), phi,
                        cosine - math.sin(math.pi - m) * m)
        one_hot = jax.nn.one_hot(label, cosine.shape[1], dtype=cosine.dtype)
        return (one_hot * phi + (1.0 - one_hot) * cosine) * s

    expected = reference(x, weight, label)
    assert out.shape == (B, C), out.shape
    assert bool(jnp.all(jnp.isfinite(out)))
    err = float(jnp.max(jnp.abs(out - expected)))
    assert err < 0.25, f"max abs error {err}"
    print("KERNEL_OK")
</pallas_src>

<mosaic_0001>
module attributes {stable_mosaic.version = 11 : i64} {
  func.func @_arc_margin_kernel(%arg0: i32, %arg1: memref<8x128xf32, #tpu.memory_space<vmem>>, %arg2: memref<128x128xf32, #tpu.memory_space<vmem>>, %arg3: memref<8x1xi32, #tpu.memory_space<vmem>>, %arg4: memref<8x128xf32, #tpu.memory_space<vmem>>) attributes {dimension_semantics = [#tpu.dimension_semantics<parallel>], iteration_bounds = array<i64: 2>, scalar_prefetch = 0 : i64, scratch_operands = 0 : i64, tpu.core_type = #tpu.core_type<tc>, window_params = [{pipeline_mode = #tpu.pipeline_mode<synchronous>, transform_indices = @transform_0, window_bounds = array<i64: 8, 128>}, {transform_indices = @transform_1, window_bounds = array<i64: 128, 128>}, {pipeline_mode = #tpu.pipeline_mode<synchronous>, transform_indices = @transform_2, window_bounds = array<i64: 8, 1>}, {transform_indices = @transform_3, window_bounds = array<i64: 8, 128>}]} {
    %c0 = arith.constant 0 : index
    %c0_0 = arith.constant 0 : index
    %0 = vector.load %arg1[%c0, %c0_0] : memref<8x128xf32, #tpu.memory_space<vmem>>, vector<8x128xf32>
    %c0_1 = arith.constant 0 : index
    %c0_2 = arith.constant 0 : index
    %1 = vector.load %arg2[%c0_1, %c0_2] : memref<128x128xf32, #tpu.memory_space<vmem>>, vector<128x128xf32>
    %2 = arith.mulf %0, %0 : vector<8x128xf32>
    %cst = arith.constant dense<0.000000e+00> : vector<8xf32>
    %3 = vector.multi_reduction <add>, %2, %cst [1] : vector<8x128xf32> to vector<8xf32>
    %4 = vector.shape_cast %3 : vector<8xf32> to vector<8x1xf32>
    %cst_3 = arith.constant 1.000000e-24 : f32
    %5 = vector.broadcast %cst_3 : f32 to vector<8x1xf32>
    %6 = arith.maximumf %4, %5 : vector<8x1xf32>
    %7 = math.rsqrt %6 : vector<8x1xf32>
    %8 = arith.mulf %1, %1 : vector<128x128xf32>
    %cst_4 = arith.constant dense<0.000000e+00> : vector<128xf32>
    %9 = vector.multi_reduction <add>, %8, %cst_4 [1] : vector<128x128xf32> to vector<128xf32>
    %10 = vector.shape_cast %9 : vector<128xf32> to vector<128x1xf32>
    %cst_5 = arith.constant 1.000000e-24 : f32
    %11 = vector.broadcast %cst_5 : f32 to vector<128x1xf32>
    %12 = arith.maximumf %10, %11 : vector<128x1xf32>
    %13 = math.rsqrt %12 : vector<128x1xf32>
    %14 = vector.broadcast %7 : vector<8x1xf32> to vector<8x128xf32>
    %15 = arith.mulf %0, %14 : vector<8x128xf32>
    %16 = arith.truncf %15 : vector<8x128xf32> to vector<8x128xbf16>
    %17 = vector.broadcast %13 : vector<128x1xf32> to vector<128x128xf32>
    %18 = arith.mulf %1, %17 : vector<128x128xf32>
    %19 = arith.truncf %18 : vector<128x128xf32> to vector<128x128xbf16>
    %cst_6 = arith.constant dense<0.000000e+00> : vector<8x128xf32>
    %20 = tpu.matmul %16, %19, %cst_6 {dimension_numbers = #tpu.dot_dimension_numbers<[1], [1], [0], [0], [0, 0, 1, 0], [], []>} : vector<8x128xbf16>, vector<128x128xbf16>, vector<8x128xf32> -> vector<8x128xf32>
    %21 = arith.mulf %20, %20 : vector<8x128xf32>
    %cst_7 = arith.constant 1.000000e+00 : f32
    %22 = vector.broadcast %cst_7 : f32 to vector<8x128xf32>
    %23 = arith.subf %22, %21 : vector<8x128xf32>
    %cst_8 = arith.constant 0.000000e+00 : f32
    %cst_9 = arith.constant 1.000000e+00 : f32
    %24 = vector.broadcast %cst_8 : f32 to vector<8x128xf32>
    %25 = arith.maximumf %24, %23 : vector<8x128xf32>
    %26 = vector.broadcast %cst_9 : f32 to vector<8x128xf32>
    %27 = arith.minimumf %26, %25 : vector<8x128xf32>
    %28 = math.sqrt %27 : vector<8x128xf32>
    %cst_10 = arith.constant 0.87758255 : f32
    %29 = vector.broadcast %cst_10 : f32 to vector<8x128xf32>
    %30 = arith.mulf %20, %29 : vector<8x128xf32>
    %cst_11 = arith.constant 0.47942555 : f32
    %31 = vector.broadcast %cst_11 : f32 to vector<8x128xf32>
    %32 = arith.mulf %28, %31 : vector<8x128xf32>
    %33 = arith.subf %30, %32 : vector<8x128xf32>
    %cst_12 = arith.constant -0.87758255 : f32
    %34 = vector.broadcast %cst_12 : f32 to vector<8x128xf32>
    %35 = arith.cmpf ogt, %20, %34 : vector<8x128xf32>
    %cst_13 = arith.constant 0.239712775 : f32
    %36 = vector.broadcast %cst_13 : f32 to vector<8x128xf32>
    %37 = arith.subf %20, %36 : vector<8x128xf32>
    %38 = arith.select %35, %33, %37 : vector<8x128xi1>, vector<8x128xf32>
    %c128_i32 = arith.constant 128 : i32
    %39 = arith.muli %arg0, %c128_i32 : i32
    %40 = tpu.iota {dimensions = array<i32: 1>} : vector<8x128xi32>
    %41 = vector.broadcast %39 : i32 to vector<8x128xi32>
    %42 = arith.addi %41, %40 : vector<8x128xi32>
    %c0_14 = arith.constant 0 : index
    %c0_15 = arith.constant 0 : index
    %43 = vector.load %arg3[%c0_14, %c0_15] : memref<8x1xi32, #tpu.memory_space<vmem>>, vector<8x1xi32>
    %44 = vector.broadcast %43 : vector<8x1xi32> to vector<8x128xi32>
    %45 = arith.cmpi eq, %42, %44 : vector<8x128xi32>
    %46 = arith.select %45, %38, %20 : vector<8x128xi1>, vector<8x128xf32>
    %cst_16 = arith.constant 3.000000e+01 : f32
    %47 = vector.broadcast %cst_16 : f32 to vector<8x128xf32>
    %48 = arith.mulf %46, %47 : vector<8x128xf32>
    %c0_17 = arith.constant 0 : index
    %c0_18 = arith.constant 0 : index
    %49 = vector.load %arg4[%c0_17, %c0_18] : memref<8x128xf32, #tpu.memory_space<vmem>>, vector<8x128xf32>
    tpu.vector_store %arg4[%c0_17, %c0_18], %48 {strides = array<i32>} : memref<8x128xf32, #tpu.memory_space<vmem>>, vector<8x128xf32>,
    return
  }
  func.func @transform_0(%arg0: i32) -> (i32, i32) {
    %c0_i32 = arith.constant 0 : i32
    %c0_i32_0 = arith.constant 0 : i32
    %c0_i32_1 = arith.constant 0 : i32
    return %c0_i32, %c0_i32_0 : i32, i32
  }
  func.func @transform_1(%arg0: i32) -> (i32, i32) {
    %c0_i32 = arith.constant 0 : i32
    %c0_i32_0 = arith.constant 0 : i32
    return %arg0, %c0_i32 : i32, i32
  }
  func.func @transform_2(%arg0: i32) -> (i32, i32) {
    %c0_i32 = arith.constant 0 : i32
    %c0_i32_0 = arith.constant 0 : i32
    %c0_i32_1 = arith.constant 0 : i32
    return %c0_i32, %c0_i32_0 : i32, i32
  }
  func.func @transform_3(%arg0: i32) -> (i32, i32) {
    %c0_i32 = arith.constant 0 : i32
    %c0_i32_0 = arith.constant 0 : i32
    return %c0_i32, %arg0 : i32, i32
  }
}

</mosaic_0001>

<bundles_post_ra>
// kernel: arc_margin_product.1
= control target key start
LH: loop header
LB: loop body
LE: loop exit
PB: predicated region body
PF: predicated region fallthrough
CT: control target
= control target key end

     0   :  { %8 = vsyncpa [#allocation3], 0  ;;  %s1011_s0 = inlined_call_operand.vmem [shape: f32[8,128], index: 0, kind: input, shape index: {}]   ;;  %s1012_s1 = inlined_call_operand.hbm [shape: f32[256,128], index: 1, kind: input, shape index: {}]   ;;  %s1013_s2 = inlined_call_operand.vmem [shape: s32[8,1], index: 2, kind: input, shape index: {}]   ;;  %s1014_s3 = inlined_call_operand.hbm [shape: f32[8,256], index: 3, kind: output, shape index: {}]  }
   0x1   :  { %10 = vsyncpa [#allocation3 + $0x1], 0 }
   0x2   :  { %11 = vsyncpa [#allocation4], 0 }
   0x3   :  { %13 = vsyncpa [#allocation4 + $0x1], 0  ;;  %s732_s12 = smov 0   ;;  %s734_s13 = smov 0  }
   0x4   :  { %s736_s14 = smov 0   ;;  %s738_s15 = smov 0  }
   0x5 LB: > { %s753_s16 = sadd.s32 4294967295, %s703_s15   ;;  %s473_s17 = sadd.s32 4294967294, %s703_s15   ;;  %s703_s15 = sphi %s738_s15, %s1027_s15   ;;  %s699_s14 = sphi %s736_s14, %s1026_s14   ;;  %s695_s13 = sphi %s734_s13, %s1025_s13   ;;  %s691_s12 = sphi %s732_s12, %s1024_s12  }
   0x6   : > { %s757_s18 = sadd.s32 1, %s703_s15   ;;  %s47_s19 = sadd.s32 1, %s699_s14 }
   0x7   : > { %s44_s20 = ssub.s32 %s703_s15, %s757_s18  ;;  %p54_p0 = scmp.ne.s32.totalorder %s699_s14, %s695_s13 }
   0x8   : > { %p45_p1 = scmp.eq.s32.totalorder %s44_s20, 0  ;;  %p55_p2 = scmp.eq.s32.totalorder %s703_s15, 0 }
   0x9   : > { %p60_p3 = scmp.ne.s32.totalorder %s695_s13, %s691_s12  ;;  %p61_p4 = scmp.eq.s32.totalorder %s753_s16, 0 }
   0xa   : > { %s769_s21 = scalar_select %p45_p1, %s699_s14, %s47_s19  }
   0xb   : > { %p771_p5 = por %p55_p2, %p54_p0  ;;  %p775_p6 = por %p61_p4, %p60_p3 }
   0xc   : > { %p105_p7 = scmp.eq.s32.totalorder %s753_s16, 1  ;;  %p111_p8 = scmp.eq.s32.totalorder %s473_s17, 1 }
   0xd   : > { %p530_p10 = scmp.lt.s32.totalorder %s703_s15, 2  ;;  %s137_s26 = sand.u32 1, %s699_s14  }
   0xe   : > { %p782_p11 = por %p105_p7, %p54_p0  ;;  %p786_p12 = por %p111_p8, %p60_p3 }
   0xf   : > { %s488_s27 = sshll.u32 %s703_s15, 11  ;;  %s476_s28 = sshll.u32 %s137_s26, 7 }
  0x10   : > { %s1018_s24 = scalar_select %p782_p11, 1, 0 }
  0x11   : > { %s1019_s25 = scalar_select %p786_p12, 1, 0 }
  0x12   : > { %s795_s4 = scalar_lea.hbm %s1012_s1, %s488_s27  ;;  %s141_s5 = scalar_lea.vmem [#allocation2], %s476_s28 }
  0x13   : > { %s148_s6 = sshll.u32 %s141_s5, 4  ;;  %p799_p13 = pnand %p530_p10, %p771_p5  ;;  %s803_s6 = int_to_ptr.vmem [resolvable:$true] %s148_s6 }
  0x14   : > { %s805_s8 = scalar_lea.sflag [#allocation3], %s137_s26  ;;  %s607_s9 = scalar_lea.hbm %s795_s4, 2048 }
  0x15   : > { %p608_p0 = scmp.ne.s32.totalorder %s795_s4, %s607_s9  ;;  %p609_p1 = pneg %p799_p13 }
  0x16   : > { %s612_s17 = scalar_lea.hbm %s1012_s1, 4096  ;;  %p613_p4 = scmp.lt.u32.totalorder %s795_s4, %s1012_s1 }
  0x17   : > { %p610_p2 = pnand %p609_p1, %p608_p0  ;;  %p614_p5 = scmp.lt.u32.totalorder %s612_s17, %s607_s9 }
  0x18   : > { %p616_p8 = scmp.lt.u32.totalorder %s607_s9, %s795_s4 }
  0x19   : > { %p611_p3 = pneg %p610_p2  ;;  %p615_p7 = por %p614_p5, %p613_p4 }
  0x1b   : > { %p617_p10 = por %p616_p8, %p615_p7 }
  0x1d   : > { %p618_p9 = pnand %p617_p10, %p611_p3 }
  0x1f   : > { %621 = shalt.err (!%p618_p9)
}
  0x20   : > { %s622_s22 = scalar_lea.vmem %s803_s6, 2048  ;;  %s705_s26 = smov [#allocation2]  }
  0x21   : > { %p623_p0 = scmp.ne.s32.totalorder %s803_s6, %s622_s22  ;;  %s627_s27 = sshll.u32 %s705_s26, 4  ;;  %s628_s27 = int_to_ptr.vmem [resolvable:$false] %s627_s27 }
  0x22   : > { %s629_s28 = scalar_lea.vmem %s628_s27, 4096  ;;  %p630_p11 = scmp.lt.s32.totalorder %s803_s6, %s628_s27 }
  0x23   : > { %p625_p2 = pnand %p623_p0, %p609_p1  ;;  %p631_p4 = scmp.lt.s32.totalorder %s629_s28, %s622_s22 }
  0x25   : > { %p626_p12 = pneg %p625_p2  ;;  %p632_p5 = por %p631_p4, %p630_p11 }
  0x27   : > { %p633_p7 = pnand %p632_p5, %p626_p12 }
  0x29   : > { %636 = shalt.err (!%p633_p7)
}
  0x2a   : > { %s706_s29 = smov 128   ;;  %s707_s30 = smov 8  }
  0x2b   : > { %525 = dma.hbm_to_vmem [thread:$0]  (!%p799_p13), %s795_s4, 2048, %s803_s6, %s805_s8, %s706_s29, %s706_s29, %s707_s30  }
  0x2c   : > { %p479_p9 = scmp.ge.s32.totalorder %s703_s15, 1  ;;  %p156_p1 = scmp.lt.s32.totalorder %s703_s15, 3 }
  0x2e   : > { %p157_p3 = pnand %p479_p9, %p156_p1 }
  0x2f   : > { %s836_s5 = sand.u32 (!%p157_p3), 1, %s695_s13  }
  0x30   : > { %160 = sbr.rel (%p157_p3) target bundleno = 542 (0x21e), region = 32  ;;  %s480_s9 = sshll.u32 (!%p157_p3), %s836_s5, 7 }
  0x31   : > { %s163_s10 = scalar_lea.sflag (!%p157_p3), [#allocation3], %s836_s5  ;;  %s840_s11 = scalar_lea.vmem (!%p157_p3), [#allocation2], %s480_s9 }
  0x37   : > { %682 = dma.done.wait (%p775_p6), %s163_s10, 2048  }
  0x38   : > { %684 = vsyncadd (%p775_p6), %s163_s10, 4294965248  ;;  %v847_v0 = vld [vmem:[%s840_s11] sm:$0xff]  ;;  %v850_v1 = vld [vmem:[%s840_s11 + $0x10] sm:$0xff]  ;;  %v708_v33 = vmov 0.0   ;;  %vm709_vm0 = vmmov 0   ;;  %v710_v36 = vmov 0  }
  0x39   : > { %v853_v2 = vld [vmem:[%s840_s11 + $0x8] sm:$0xff]  ;;  %v213_v3 = vmul.f32 %v847_v0, %v847_v0  ;;  %v215_v4 = vmul.f32 %v850_v1, %v850_v1  ;;  %v860_v5 = vld [vmem:[%s840_s11 + $0x18] sm:$0xff]  ;;  %v870_v9 = vld [vmem:[%s840_s11 + $0x20] sm:$0xff]  ;;  %498 = vmatprep.subr.bf16.mxu0 %v708_v33  ;;  %514 = vmatprep.mubr.msk.bf16.mxu0 %vm709_vm0, %v708_v33  ;;  %s483_s8 = sshll.u32 %s753_s16, 7  ;;  %s481_s17 = sshll.u32 %s836_s5, 3 }
  0x3a   : > { %v214_v6 = vmul.f32 %v853_v2, %v853_v2  ;;  %v216_v7 = vmul.f32 %v860_v5, %v860_v5  ;;  %v867_v8 = vld [vmem:[%s840_s11 + $0x28] sm:$0xff]  ;;  %v217_v11 = vmul.f32 %v870_v9, %v870_v9  ;;  %v877_v12 = vld [vmem:[%s840_s11 + $0x38] sm:$0xff]  ;;  %v880_v13 = vld [vmem:[%s840_s11 + $0x30] sm:$0xff]  ;;  %569 = vset.pattern.permute.xlu1 %v710_v36  ;;  %570 = vset.pattern.permute.xlu0 %v710_v36  ;;  %s188_s16 = scalar_lea.vmem [#allocation5], %s481_s17  ;;  %s967_s26 = scalar_lea.hbm %s1014_s3, %s483_s8 }
  0x3b   : > { %229 = vadd.xlane.f32.xlu0 %v213_v3  ;;  %233 = vadd.xlane.f32.xlu1 %v215_v4  ;;  %v218_v10 = vmul.f32 %v867_v8, %v867_v8  ;;  %v220_v14 = vmul.f32 %v877_v12, %v877_v12  ;;  %v219_v15 = vmul.f32 %v880_v13, %v880_v13  ;;  %v887_v16 = vld [vmem:[%s840_s11 + $0x48] sm:$0xff]  ;;  %v890_v17 = vld [vmem:[%s840_s11 + $0x40] sm:$0xff]  ;;  %v897_v20 = vld [vmem:[%s840_s11 + $0x58] sm:$0xff]  ;;  %s403_s19 = sshll.u32 %s188_s16, 4  ;;  %s390_s27 = scalar_lea.sflag [#allocation4], %s836_s5  ;;  %s969_s19 = int_to_ptr.vmem [resolvable:$true] %s403_s19 }
  0x3c   : > { %v222_v18 = vmul.f32 %v887_v16, %v887_v16  ;;  %v221_v19 = vmul.f32 %v890_v17, %v890_v17  ;;  %v900_v21 = vld [vmem:[%s840_s11 + $0x50] sm:$0xff]  ;;  %v224_v22 = vmul.f32 %v897_v20, %v897_v20  ;;  %v907_v24 = vld [vmem:[%s840_s11 + $0x68] sm:$0xff]  ;;  %v910_v25 = vld [vmem:[%s840_s11 + $0x60] sm:$0xff]  ;;  %s637_s28 = scalar_lea.vmem %s969_s19, 128  ;;  %p1021_p11 = scmp.ne.s32.totalorder %s1018_s24, 0 }
  0x3d   : > { %v223_v23 = vmul.f32 %v900_v21, %v900_v21  ;;  %v226_v26 = vmul.f32 %v907_v24, %v907_v24  ;;  %v225_v27 = vmul.f32 %v910_v25, %v910_v25  ;;  %v917_v28 = vld [vmem:[%s840_s11 + $0x78] sm:$0xff]  ;;  %v920_v29 = vld [vmem:[%s840_s11 + $0x70] sm:$0xff]  ;;  %v929_v32 = vld [vmem:[%s1011_s0] sm:$0xff]  ;;  %p638_p6 = scmp.ne.s32.totalorder %s969_s19, %s637_s28  ;;  %s711_s29 = smov [#allocation5]  }
  0x3e   : > { %v228_v30 = vmul.f32 %v917_v28, %v917_v28  ;;  %v227_v31 = vmul.f32 %v920_v29, %v920_v29  ;;  %v208_v34 = vmul.f32 %v929_v32, %v929_v32  ;;  %v381_v35 = vld [vmem:[%s1013_s2] sm:$0xff]  ;;  %s641_s30 = sshll.u32 %s711_s29, 4  ;;  %s642_s30 = int_to_ptr.vmem [resolvable:$false] %s641_s30 }
  0x3f   : > { %231 = vadd.xlane.f32.xlu0 %v214_v6  ;;  %235 = vadd.xlane.f32.xlu1 %v216_v7  ;;  %p639_p12 = pnand %p638_p6, %p1021_p11  ;;  %s643_s9 = scalar_lea.vmem %s642_s30, 256 }
  0x40   : > { %p644_p8 = scmp.lt.s32.totalorder %s969_s19, %s642_s30  ;;  %p645_p10 = scmp.lt.s32.totalorder %s643_s9, %s637_s28 }
  0x41   : > { %p640_p13 = pneg %p639_p12 }
  0x42   : > { %p646_p0 = por %p645_p10, %p644_p8 }
  0x43   : > { %239 = vadd.xlane.f32.xlu1 %v218_v10  ;;  %237 = vadd.xlane.f32.xlu0 %v217_v11 }
  0x44   : > { %p647_p2 = pnand %p646_p0, %p640_p13 }
  0x47   : > { %243 = vadd.xlane.f32.xlu1 %v220_v14  ;;  %241 = vadd.xlane.f32.xlu0 %v219_v15 }
  0x4b   : > { %247 = vadd.xlane.f32.xlu1 %v222_v18  ;;  %245 = vadd.xlane.f32.xlu0 %v221_v19 }
  0x4f   : > { %251 = vadd.xlane.f32.xlu1 %v224_v22  ;;  %249 = vadd.xlane.f32.xlu0 %v223_v23 }
  0x53   : > { %255 = vadd.xlane.f32.xlu1 %v226_v26  ;;  %253 = vadd.xlane.f32.xlu0 %v225_v27 }
  0x57   : > { %259 = vadd.xlane.f32.xlu1 %v228_v30  ;;  %257 = vadd.xlane.f32.xlu0 %v227_v31 }
  0x5b   : > { %209 = vadd.xlane.f32.xlu0 %v208_v34 }
  0x68   : > { %383 = vperm.xlu1 %569, %v381_v35  }
  0xc8   : > { %v230_v37 = vpop.xlane.xlu0 %229  ;;  %v234_v38 = vpop.xlane.xlu1 %233 }
  0xc9   : > { %v261_v39 = vmax.f32 %v230_v37, 1e-24  ;;  %v263_v43 = vmax.f32 %v234_v38, 1e-24 }
  0xcb   : > { %571 = vrsqrt.f32 %v261_v39 }
  0xcc   : > { %v232_v40 = vpop.xlane.xlu0 %231  ;;  %v236_v41 = vpop.xlane.xlu1 %235 }
  0xcd   : > { %v262_v42 = vmax.f32 %v232_v40, 1e-24  ;;  %v264_v44 = vmax.f32 %v236_v41, 1e-24 }
  0xcf   : > { %573 = vrsqrt.f32 %v262_v42 }
  0xd0   : > { %v240_v45 = vpop.xlane.xlu1 %239  ;;  %575 = vrsqrt.f32 %v263_v43  ;;  %v238_v46 = vpop.xlane.xlu0 %237 }
  0xd1   : > { %577 = vrsqrt.f32 %v264_v44  ;;  %v266_v47 = vmax.f32 %v240_v45, 1e-24  ;;  %v265_v48 = vmax.f32 %v238_v46, 1e-24 }
  0xd3   : > { %579 = vrsqrt.f32 %v266_v47 }
  0xd4   : > { %581 = vrsqrt.f32 %v265_v48  ;;  %v244_v51 = vpop.xlane.xlu1 %243  ;;  %v242_v54 = vpop.xlane.xlu0 %241 }
  0xd5   : > { %v572_v49 = vpop.eup %571  ;;  %v268_v57 = vmax.f32 %v244_v51, 1e-24  ;;  %v267_v59 = vmax.f32 %v242_v54, 1e-24 }
  0xd6   : > { %v295_v52 = vmul.f32 %v572_v49, %v847_v0 }
  0xd7   : > { %583 = vrsqrt.f32 %v268_v57 }
  0xd8   : > { %585 = vrsqrt.f32 %v267_v59  ;;  %v248_v62 = vpop.xlane.xlu1 %247  ;;  %v246_v0 = vpop.xlane.xlu0 %245 }
  0xd9   : > { %v574_v50 = vpop.eup %573  ;;  %v270_v4 = vmax.f32 %v248_v62, 1e-24  ;;  %v269_v6 = vmax.f32 %v246_v0, 1e-24  ;;  %v379_v62 = vstv %s483_s8 }
  0xda   : > { %v296_v53 = vmul.f32 %v574_v50, %v853_v2  ;;  %v576_v55 = vpop.eup %575 }
  0xdb   : > { %v578_v58 = vpop.eup %577  ;;  %v297_v60 = vmul.f32 %v576_v55, %v850_v1  ;;  %587 = vrsqrt.f32 %v270_v4 }
  0xdc   : > { %v311_v56 = vpack.c.bf16 %v296_v53, %v295_v52  ;;  %v298_v61 = vmul.f32 %v578_v58, %v860_v5  ;;  %589 = vrsqrt.f32 %v269_v6  ;;  %v252_v1 = vpop.xlane.xlu1 %251  ;;  %v250_v14 = vpop.xlane.xlu0 %249 }
  0xdd   : > { %v580_v63 = vpop.eup %579  ;;  %v272_v18 = vmax.f32 %v252_v1, 1e-24  ;;  %v271_v19 = vmax.f32 %v250_v14, 1e-24 }
  0xde   : > { %499 = vmatpush3.bf16.xpose.msra.mxu0 %v311_v56  ;;  %v582_v3 = vpop.eup %581  ;;  %v312_v2 = vpack.c.bf16 %v298_v61, %v297_v60  ;;  %v300_v10 = vmul.f32 %v580_v63, %v867_v8 }
  0xdf   : > { %500 = vmatprep.subr.bf16.mxu0 %v708_v33  ;;  %v299_v7 = vmul.f32 %v582_v3, %v870_v9  ;;  %591 = vrsqrt.f32 %v272_v18 }
  0xe0   : > { %593 = vrsqrt.f32 %v271_v19  ;;  %v256_v8 = vpop.xlane.xlu1 %255  ;;  %v254_v27 = vpop.xlane.xlu0 %253 }
  0xe1   : > { %v584_v11 = vpop.eup %583  ;;  %v313_v5 = vpack.c.bf16 %v300_v10, %v299_v7  ;;  %v274_v31 = vmax.f32 %v256_v8, 1e-24  ;;  %v273_v34 = vmax.f32 %v254_v27, 1e-24 }
  0xe2   : > { %v586_v15 = vpop.eup %585  ;;  %v302_v23 = vmul.f32 %v584_v11, %v877_v12 }
  0xe3   : > { %v301_v22 = vmul.f32 %v586_v15, %v880_v13  ;;  %595 = vrsqrt.f32 %v274_v31 }
  0xe4   : > { %597 = vrsqrt.f32 %v273_v34  ;;  %v260_v12 = vpop.xlane.xlu1 %259  ;;  %v258_v38 = vpop.xlane.xlu0 %257 }
  0xe5   : > { %v588_v9 = vpop.eup %587  ;;  %v314_v26 = vpack.c.bf16 %v302_v23, %v301_v22  ;;  %v276_v40 = vmax.f32 %v260_v12, 1e-24  ;;  %v275_v41 = vmax.f32 %v258_v38, 1e-24 }
  0xe6   : > { %501 = vmatpush3.bf16.xpose.msra.mxu0 %v312_v2  ;;  %v590_v30 = vpop.eup %589  ;;  %v304_v36 = vmul.f32 %v588_v9, %v887_v16 }
  0xe7   : > { %502 = vmatprep.subr.bf16.mxu0 %v708_v33  ;;  %v303_v35 = vmul.f32 %v590_v30, %v890_v17  ;;  %599 = vrsqrt.f32 %v276_v40 }
  0xe8   : > { %601 = vrsqrt.f32 %v275_v41  ;;  %v210_v16 = vpop.xlane.xlu0 %209  ;;  %v384_v2 = vpop.permute.xlu1 %383 }
  0xe9   : > { %v592_v13 = vpop.eup %591  ;;  %v315_v37 = vpack.c.bf16 %v304_v36, %v303_v35  ;;  %v211_v46 = vmax.f32 %v210_v16, 1e-24 }
  0xea   : > { %v594_v39 = vpop.eup %593  ;;  %v306_v43 = vmul.f32 %v592_v13, %v897_v20 }
  0xeb   : > { %v305_v42 = vmul.f32 %v594_v39, %v900_v21  ;;  %603 = vrsqrt.f32 %v211_v46 }
  0xed   : > { %v596_v17 = vpop.eup %595  ;;  %v316_v44 = vpack.c.bf16 %v306_v43, %v305_v42 }
  0xee   : > { %503 = vmatpush3.bf16.xpose.msra.mxu0 %v313_v5  ;;  %v598_v45 = vpop.eup %597  ;;  %v308_v48 = vmul.f32 %v596_v17, %v907_v24 }
  0xef   : > { %504 = vmatprep.subr.bf16.mxu0 %v708_v33  ;;  %v307_v47 = vmul.f32 %v598_v45, %v910_v25 }
  0xf1   : > { %v600_v21 = vpop.eup %599  ;;  %v317_v49 = vpack.c.bf16 %v308_v48, %v307_v47 }
  0xf2   : > { %v602_v20 = vpop.eup %601  ;;  %v310_v51 = vmul.f32 %v600_v21, %v917_v28  ;;  %v377_v28 = vlaneseq }
  0xf3   : > { %v309_v50 = vmul.f32 %v602_v20, %v920_v29 }
  0xf5   : > { %v604_v52 = vpop.eup %603  ;;  %v318_v53 = vpack.c.bf16 %v310_v51, %v309_v50 }
  0xf6   : > { %505 = vmatpush3.bf16.xpose.msra.mxu0 %v314_v26  ;;  %v293_v25 = vmul.f32 %v604_v52, %v929_v32 }
  0xf7   : > { %506 = vmatprep.subr.bf16.mxu0 %v708_v33 }
  0xf8   : > { %v294_v24 = vpack.c.bf16 %v293_v25, %v293_v25 }
  0xfe   : > { %507 = vmatpush3.bf16.xpose.msra.mxu0 %v315_v37 }
  0xff   : > { %508 = vmatprep.subr.bf16.mxu0 %v708_v33 }
 0x106   : > { %509 = vmatpush3.bf16.xpose.msra.mxu0 %v316_v44 }
 0x107   : > { %510 = vmatprep.subr.bf16.mxu0 %v708_v33 }
 0x10e   : > { %511 = vmatpush3.bf16.xpose.msra.mxu0 %v317_v49 }
 0x10f   : > { %512 = vmatprep.subr.bf16.mxu0 %v708_v33  ;;  %v378_v33 = vand.u32 127, %v377_v28 }
 0x111   : > { %v380_v0 = vadd.s32 %v379_v62, %v378_v33 }
 0x113   : > { %vm385_vm3 = vcmp.eq.s32.totalorder %v380_v0, %v384_v2 }
 0x116   : > { %513 = vmatpush3.bf16.xpose.msra.mxu0 %v318_v53 }
 0x11d   : > { %515 = vmatmul.mubr.bf16.vlgmr.msra.gmra.mrb[0].mxu0 %v294_v24 }
 0x1f0   : > { %v353_v54 = vpop.f32.mrb[0].mxu0 }
 0x1f1   : > { %v359_v55 = vmul.f32 %v353_v54, %v353_v54  ;;  %v516_v56 = vpop.f32.mrb[1].mxu0  ;;  %v370_v6 = vmul.f32 0.87758255, %v353_v54  ;;  %v482_v10 = vadd.f32 -0.23971277, %v353_v54 }
 0x1f2   : > { %v356_v57 = vpop.f32.mrb[2].mxu0  ;;  %vm373_vm4 = vcmp.gt.f32.partialorder %v353_v54, -0.87758255 }
 0x1f3   : > { %v360_v58 = vsub.f32 1.0, %v359_v55  ;;  %v517_v59 = vpop.f32.mrb[3].mxu0 }
 0x1f5   : > { %v361_v29 = vmax.f32 %v360_v58, 0.0 }
 0x1f7   : > { %v362_v60 = vmin.f32 %v361_v29, 1.0 }
 0x1f9   : > { %605 = vrsqrt.f32 %v362_v60  ;;  %vm365_vm1 = vcmp.eq.f32.partialorder %v362_v60, inf  ;;  %v368_v32 = vand.u32 2147483648, %v362_v60  ;;  %vm367_vm2 = vcmp.eq.f32.partialorder %v362_v60, 0.0 }
 0x203   : > { %v606_v61 = vpop.eup %605 }
 0x204   : > { %v364_v63 = vmul.f32 %v606_v61, %v362_v60 }
 0x206   : > { %v366_v3 = vsel %vm365_vm1, %v362_v60, %v364_v63 }
 0x207   : > { %v369_v4 = vsel %vm367_vm2, %v368_v32, %v366_v3 }
 0x208   : > { %v371_v7 = vmul.f32 0.47942555, %v369_v4 }
 0x20a   : > { %v372_v1 = vsub.f32 %v370_v6, %v371_v7 }
 0x20c   : > { %v375_v11 = vsel %vm373_vm4, %v372_v1, %v482_v10 }
 0x20d   : > { %v386_v5 = vsel %vm385_vm3, %v375_v11, %v353_v54 }
 0x20e   : > { %v387_v14 = vmul.f32 30.0, %v386_v5 }
 0x210   : > { %388 = vst [vmem:[%s188_s16] sm:$0xff] %v387_v14 }
 0x211   : > { %650 = shalt.err (!%p647_p2)
}
 0x212   : > { %s651_s5 = scalar_lea.hbm %s967_s26, 128  ;;  %s655_s23 = scalar_lea.hbm %s1014_s3, 256 }
 0x213   : > { %p652_p4 = scmp.ne.s32.totalorder %s967_s26, %s651_s5  ;;  %p656_p9 = scmp.lt.u32.totalorder %s967_s26, %s1014_s3 }
 0x214   : > { %p657_p1 = scmp.lt.u32.totalorder %s655_s23, %s651_s5  ;;  %p659_p6 = scmp.lt.u32.totalorder %s651_s5, %s967_s26 }
 0x215   : > { %p653_p5 = pnand %p652_p4, %p1021_p11 }
 0x216   : > { %p658_p3 = por %p657_p1, %p656_p9 }
 0x217   : > { %p654_p7 = pneg %p653_p5 }
 0x218   : > { %p660_p12 = por %p659_p6, %p658_p3 }
 0x21a   : > { %p661_p13 = pnand %p660_p12, %p654_p7 }
 0x21c   : > { %664 = shalt.err (!%p661_p13)
}
 0x21d   : > { %520 = dma.vmem_to_hbm [thread:$0]  (%p1021_p11), %s969_s19, 128, %s967_s26, %s390_s27  }
 0x21e PF: > { %s415_s7 = sand.u32 1, %s691_s12   ;;  %p1022_p8 = scmp.ne.s32.totalorder %s1019_s25, 0 }
 0x21f   : > { %p1023_p10 = scmp.ge.s32.totalorder %s703_s15, 2  ;;  %s416_s8 = scalar_lea.sflag [#allocation4], %s415_s7 }
 0x221   : > { %p527_p0 = pnand %p1023_p10, %p1022_p8 }
 0x223   : > { %686 = dma.done.wait (!%p527_p0), %s416_s8, 128  }
 0x224   : > { %688 = vsyncadd (!%p527_p0), %s416_s8, 4294967168  ;;  %p16_p2 = scmp.ge.s32.totalorder %s757_s18, 4   ;;  %s1024_s12 = smov %s695_s13 }
 0x225   : > { %s1025_s13 = smov %s699_s14  ;;  %s1026_s14 = smov %s769_s21 }
 0x226   : > { %s1027_s15 = smov %s757_s18  ;;  %18 = sbr.rel (!%p16_p2) target bundleno = 5 (0x5), region = 77 }
 0x22d   :  { %421 = vsyncpa [#allocation3], 1 }
 0x22e   :  { %423 = vsyncpa [#allocation3 + $0x1], 1 }
 0x22f   :  { %424 = vsyncpa [#allocation4], 1 }
 0x230   :  { %426 = vsyncpa [#allocation4 + $0x1], 1 }

</bundles_post_ra>
